<compile_context>
chip_gen: v7x
topology: tpu7x:2x2x1
jax: 0.10.0
libtpu: 0.0.40
codegen_flags: <defaults>
</compile_context>

<pallas_src>
import functools

import jax
import jax.numpy as jnp
from jax.experimental import pallas as pl
from jax.experimental.pallas import tpu as pltpu


def _round_up(n: int, m: int) -> int:
    return ((n + m - 1) // m) * m


# ----------------------------------------------------------------------------- kernel

def _mlp_kernel(x_ref, w1_ref, b1_ref, w2_ref, b2_ref, out_ref):
    # Two MXU matmuls (f32 accumulation) + VPU bias-add / ReLU, all in VMEM.
    x = x_ref[...]                                                    # (TB, C)  compute dtype
    h = jnp.dot(x, w1_ref[...], preferred_element_type=jnp.float32)  # (TB, Hp) f32
    h = jnp.maximum(h + b1_ref[...], 0.0)                            # f32 bias + ReLU
    h = h.astype(w2_ref.dtype)                                       # back to MXU input dtype
    y = jnp.dot(h, w2_ref[...], preferred_element_type=jnp.float32)  # (TB, F)  f32
    out_ref[...] = (y + b2_ref[...]).astype(out_ref.dtype)


# ------------------------------------------------------------------- one-time param prep

def prepare_params(w1, b1, w2, b2, *, compute_dtype=jnp.bfloat16):
    """One-time padding/casting of g()'s parameters (hoisted out of the per-call path).

    w1 : (n_concepts, 500)    b1 : (500,) or (1, 500)
    w2 : (500, n_features)    b2 : (n_features,) or (1, n_features)

    Hidden dim is zero-padded 500 -> 512 (lane-dense); the feature dim is left
    unpadded (output writeback dominates HBM bytes — see module docstring).
    """
    C, H = w1.shape
    F = w2.shape[1]
    assert w2.shape[0] == H
    Hp = _round_up(H, 128)  # 500 -> 512

    w1p = jnp.zeros((C, Hp), compute_dtype).at[:, :H].set(w1.astype(compute_dtype))
    b1p = jnp.zeros((1, Hp), jnp.float32).at[:, :H].set(
        jnp.reshape(b1, (1, H)).astype(jnp.float32))
    w2p = jnp.zeros((Hp, F), compute_dtype).at[:H, :].set(w2.astype(compute_dtype))
    b2p = jnp.reshape(b2, (1, F)).astype(jnp.float32)
    return dict(w1p=w1p, b1p=b1p, w2p=w2p, b2p=b2p,
                n_concepts=C, hidden=H, hidden_padded=Hp, n_features=F,
                compute_dtype=jnp.dtype(compute_dtype))


# ----------------------------------------------------------------------- kernel wrapper

def concept_shap_forward_prepared(x, params, *, block_b=2048, out_dtype=jnp.float32):
    """g(x) = ReLU(x @ w1 + b1) @ w2 + b2 with pre-padded params (see prepare_params)."""
    B, C = x.shape
    assert C == params["n_concepts"]
    Hp = params["hidden_padded"]
    F = params["n_features"]
    compute_dtype = params["compute_dtype"]
    w1p, b1p, w2p, b2p = params["w1p"], params["b1p"], params["w2p"], params["b2p"]

    # --- batch tiling ----------------------------------------------------------------
    # Cap the tile so the grid has >= 2 steps for large B (lets v7x's two TensorCores
    # split the "parallel" batch axis instead of idling one core at grid=1).
    # block_b default (2048) keeps per-step VMEM < v5e's 16 MiB scoped default.
    two_core_cap = _round_up(max(8, -(-B // 2)), 8)
    tb = _round_up(min(block_b, two_core_cap), 8)
    Bp = _round_up(B, tb)
    xp = x.astype(compute_dtype)
    if Bp != B:
        xp = jnp.pad(xp, ((0, Bp - B), (0, 0)))
    grid = (Bp // tb,)

    itm = jnp.dtype(compute_dtype).itemsize
    out_itm = jnp.dtype(out_dtype).itemsize
    cost = pl.CostEstimate(
        flops=2 * Bp * (C * Hp + Hp * F),
        transcendentals=0,
        bytes_accessed=(Bp * C * itm                       # x streamed
                        + C * Hp * itm + Hp * F * itm      # weights (resident, read once)
                        + Hp * 4 + F * 4                   # biases
                        + Bp * F * out_itm),               # output writeback
    )

    out = pl.pallas_call(
        _mlp_kernel,
        out_shape=jax.ShapeDtypeStruct((Bp, F), out_dtype),
        grid=grid,
        in_specs=[
            pl.BlockSpec((tb, C), lambda i: (i, 0)),     # x: streamed per batch tile
            pl.BlockSpec((C, Hp), lambda i: (0, 0)),     # weights/biases: VMEM-resident
            pl.BlockSpec((1, Hp), lambda i: (0, 0)),
            pl.BlockSpec((Hp, F), lambda i: (0, 0)),
            pl.BlockSpec((1, F), lambda i: (0, 0)),
        ],
        out_specs=pl.BlockSpec((tb, F), lambda i: (i, 0)),  # F == full array dim -> legal
        compiler_params=pltpu.CompilerParams(dimension_semantics=("parallel",)),
        cost_estimate=cost,
    )(xp, w1p, b1p, w2p, b2p)

    # Only slice when the batch was actually padded (no extra HBM pass otherwise).
    return out[:B] if Bp != B else out


# --------------------------------------------------------------- convenience / dispatch

def reference_forward(x, w1, b1, w2, b2):
    h = jnp.maximum(x @ jnp.asarray(w1) + jnp.reshape(b1, (1, -1)), 0.0)
    return h @ jnp.asarray(w2) + jnp.reshape(b2, (1, -1))


def concept_shap_forward(x, w1, b1, w2, b2, *, block_b=2048,
                         compute_dtype=jnp.bfloat16, out_dtype=jnp.float32,
                         small_batch_threshold=256, force_kernel=False):
    """Dispatching wrapper: small batches go to the XLA-fused path (the pallas_call is
    pure fixed overhead there); large batches go to the batch-tiled Pallas kernel.
    Note: this convenience wrapper prepares params per call — production use should
    call prepare_params() once and concept_shap_forward_prepared() per step.
    """
    B = x.shape[0]
    if B < small_batch_threshold and not force_kernel:
        return reference_forward(x, w1, b1, w2, b2).astype(out_dtype)
    params = prepare_params(w1, b1, w2, b2, compute_dtype=compute_dtype)
    return concept_shap_forward_prepared(x, params, block_b=block_b, out_dtype=out_dtype)


# ---------------------------------------------------------------------------------- demo

if __name__ == "__main__":
    # Module hyper-parameters (small, consistent with the PyTorch __init__).
    n_concepts = 8
    n_features = 32
    hidden = 500          # hardcoded in the module: nn.Linear(n_concepts, 500)
    batch = 40            # exercises grid > 1 and ragged-batch padding with block_b=16

    key = jax.random.PRNGKey(0)
    kx, kw1, kb1, kw2, kb2 = jax.random.split(key, 5)

    # Deterministic synthetic parameters (module's __init__ gives only shapes).
    x = jax.random.normal(kx, (batch, n_concepts), dtype=jnp.float32)
    w1 = jax.random.normal(kw1, (n_concepts, hidden), dtype=jnp.float32) * 0.1
    b1 = jax.random.normal(kb1, (1, hidden), dtype=jnp.float32) * 0.1
    w2 = jax.random.normal(kw2, (hidden, n_features), dtype=jnp.float32) * 0.1
    b2 = jax.random.normal(kb2, (1, n_features), dtype=jnp.float32) * 0.1

    ref = reference_forward(x, w1, b1, w2, b2)

    # --- Pallas kernel, exact-semantics path (f32 matmuls), small tiles -> multi-step grid.
    params_f32 = prepare_params(w1, b1, w2, b2, compute_dtype=jnp.float32)
    out_f32 = concept_shap_forward_prepared(x, params_f32, block_b=16)

    # --- Pallas kernel, optimized path (bf16 matmul inputs, f32 accum / bias / ReLU).
    params_bf16 = prepare_params(w1, b1, w2, b2, compute_dtype=jnp.bfloat16)
    out_bf16 = concept_shap_forward_prepared(x, params_bf16, block_b=16)

    # --- Pallas kernel via the dispatch wrapper with default (large) tiles, forced on.
    out_big = concept_shap_forward(x, w1, b1, w2, b2, force_kernel=True)

    # --- Dispatch wrapper, small-batch route (XLA fused reference path).
    out_dispatch = concept_shap_forward(x, w1, b1, w2, b2)

    out_f32, out_bf16, out_big, out_dispatch = jax.block_until_ready(
        (out_f32, out_bf16, out_big, out_dispatch))

    assert out_f32.shape == (batch, n_features)
    assert out_bf16.shape == (batch, n_features)
    assert out_big.shape == (batch, n_features)
    assert jnp.allclose(out_f32, ref, atol=1e-4, rtol=1e-4), "f32 kernel mismatch vs reference"
    assert jnp.allclose(out_bf16, ref, atol=3e-2, rtol=3e-2), "bf16 kernel mismatch vs reference"
    assert jnp.allclose(out_big, ref, atol=3e-2, rtol=3e-2), "large-tile kernel mismatch"
    assert jnp.allclose(out_dispatch, ref, atol=1e-5, rtol=1e-5), "dispatch path mismatch"

    # TODO(synk): the module's vc() method (C linear + threshold + L2 normalize) is not
    # part of forward() and is therefore not implemented as a kernel here.
    print("KERNEL_OK")
</pallas_src>

<mosaic_0001>
module attributes {stable_mosaic.version = 11 : i64} {
  func.func @_mlp_kernel(%arg0: i32, %arg1: memref<16x8xf32, #tpu.memory_space<vmem>>, %arg2: memref<8x512xf32, #tpu.memory_space<vmem>>, %arg3: memref<1x512xf32, #tpu.memory_space<vmem>>, %arg4: memref<512x32xf32, #tpu.memory_space<vmem>>, %arg5: memref<1x32xf32, #tpu.memory_space<vmem>>, %arg6: memref<16x32xf32, #tpu.memory_space<vmem>>) attributes {dimension_semantics = [#tpu.dimension_semantics<parallel>], iteration_bounds = array<i64: 3>, scalar_prefetch = 0 : i64, scratch_operands = 0 : i64, tpu.core_type = #tpu.core_type<tc>, window_params = [{transform_indices = @transform_0, window_bounds = array<i64: 16, 8>}, {pipeline_mode = #tpu.pipeline_mode<synchronous>, transform_indices = @transform_1, window_bounds = array<i64: 8, 512>}, {pipeline_mode = #tpu.pipeline_mode<synchronous>, transform_indices = @transform_2, window_bounds = array<i64: 1, 512>}, {pipeline_mode = #tpu.pipeline_mode<synchronous>, transform_indices = @transform_3, window_bounds = array<i64: 512, 32>}, {pipeline_mode = #tpu.pipeline_mode<synchronous>, transform_indices = @transform_4, window_bounds = array<i64: 1, 32>}, {transform_indices = @transform_5, window_bounds = array<i64: 16, 32>}]} {
    %c0 = arith.constant 0 : index
    %c0_0 = arith.constant 0 : index
    %0 = vector.load %arg1[%c0, %c0_0] : memref<16x8xf32, #tpu.memory_space<vmem>>, vector<16x8xf32>
    %c0_1 = arith.constant 0 : index
    %c0_2 = arith.constant 0 : index
    %1 = vector.load %arg2[%c0_1, %c0_2] : memref<8x512xf32, #tpu.memory_space<vmem>>, vector<8x512xf32>
    %cst = arith.constant dense<0.000000e+00> : vector<16x512xf32>
    %2 = tpu.matmul %0, %1, %cst {dimension_numbers = #tpu.dot_dimension_numbers<[1], [0], [0], [1], [0, 0, 1, 1], [], []>} : vector<16x8xf32>, vector<8x512xf32>, vector<16x512xf32> -> vector<16x512xf32>
    %c0_3 = arith.constant 0 : index
    %c0_4 = arith.constant 0 : index
    %3 = vector.load %arg3[%c0_3, %c0_4] : memref<1x512xf32, #tpu.memory_space<vmem>>, vector<1x512xf32>
    %4 = vector.broadcast %3 : vector<1x512xf32> to vector<16x512xf32>
    %5 = arith.addf %2, %4 : vector<16x512xf32>
    %cst_5 = arith.constant 0.000000e+00 : f32
    %6 = vector.broadcast %cst_5 : f32 to vector<16x512xf32>
    %7 = arith.maximumf %5, %6 : vector<16x512xf32>
    %c0_6 = arith.constant 0 : index
    %c0_7 = arith.constant 0 : index
    %8 = vector.load %arg4[%c0_6, %c0_7] : memref<512x32xf32, #tpu.memory_space<vmem>>, vector<512x32xf32>
    %cst_8 = arith.constant dense<0.000000e+00> : vector<16x32xf32>
    %9 = tpu.matmul %7, %8, %cst_8 {dimension_numbers = #tpu.dot_dimension_numbers<[1], [0], [0], [1], [0, 0, 1, 1], [], []>} : vector<16x512xf32>, vector<512x32xf32>, vector<16x32xf32> -> vector<16x32xf32>
    %c0_9 = arith.constant 0 : index
    %c0_10 = arith.constant 0 : index
    %10 = vector.load %arg5[%c0_9, %c0_10] : memref<1x32xf32, #tpu.memory_space<vmem>>, vector<1x32xf32>
    %11 = vector.broadcast %10 : vector<1x32xf32> to vector<16x32xf32>
    %12 = arith.addf %9, %11 : vector<16x32xf32>
    %c0_11 = arith.constant 0 : index
    %c0_12 = arith.constant 0 : index
    %13 = vector.load %arg6[%c0_11, %c0_12] : memref<16x32xf32, #tpu.memory_space<vmem>>, vector<16x32xf32>
    tpu.vector_store %arg6[%c0_11, %c0_12], %12 {strides = array<i32>} : memref<16x32xf32, #tpu.memory_space<vmem>>, vector<16x32xf32>,
    return
  }
  func.func @transform_0(%arg0: i32) -> (i32, i32) {
    %c0_i32 = arith.constant 0 : i32
    %c0_i32_0 = arith.constant 0 : i32
    return %arg0, %c0_i32 : i32, i32
  }
  func.func @transform_1(%arg0: i32) -> (i32, i32) {
    %c0_i32 = arith.constant 0 : i32
    %c0_i32_0 = arith.constant 0 : i32
    %c0_i32_1 = arith.constant 0 : i32
    return %c0_i32, %c0_i32_0 : i32, i32
  }
  func.func @transform_2(%arg0: i32) -> (i32, i32) {
    %c0_i32 = arith.constant 0 : i32
    %c0_i32_0 = arith.constant 0 : i32
    %c0_i32_1 = arith.constant 0 : i32
    return %c0_i32, %c0_i32_0 : i32, i32
  }
  func.func @transform_3(%arg0: i32) -> (i32, i32) {
    %c0_i32 = arith.constant 0 : i32
    %c0_i32_0 = arith.constant 0 : i32
    %c0_i32_1 = arith.constant 0 : i32
    return %c0_i32, %c0_i32_0 : i32, i32
  }
  func.func @transform_4(%arg0: i32) -> (i32, i32) {
    %c0_i32 = arith.constant 0 : i32
    %c0_i32_0 = arith.constant 0 : i32
    %c0_i32_1 = arith.constant 0 : i32
    return %c0_i32, %c0_i32_0 : i32, i32
  }
  func.func @transform_5(%arg0: i32) -> (i32, i32) {
    %c0_i32 = arith.constant 0 : i32
    %c0_i32_0 = arith.constant 0 : i32
    return %arg0, %c0_i32 : i32, i32
  }
}

</mosaic_0001>

<bundles_post_ra>
// kernel: tpu_custom_call.1
= control target key start
LH: loop header
LB: loop body
LE: loop exit
PB: predicated region body
PF: predicated region fallthrough
CT: control target
= control target key end

     0   :  { %s909_s18 = smov 0   ;;  %s1147_s0 = inlined_call_operand.vmem [shape: f32[48,8], index: 0, kind: input, shape index: {}]   ;;  %s1148_s1 = inlined_call_operand.vmem [shape: f32[8,512], index: 1, kind: input, shape index: {}]   ;;  %s1149_s2 = inlined_call_operand.vmem [shape: f32[1,512], index: 2, kind: input, shape index: {}]   ;;  %s1150_s3 = inlined_call_operand.vmem [shape: f32[512,32], index: 3, kind: input, shape index: {}]   ;;  %s1151_s4 = inlined_call_operand.vmem [shape: f32[1,32], index: 4, kind: input, shape index: {}]   ;;  %s1152_s5 = inlined_call_operand.vmem [shape: f32[48,32], index: 5, kind: output, shape index: {}]  }
   0x1 LB: > { %s705_s19 = sadd.s32 4294967295, %s876_s18   ;;  %p709_p0 = scmp.ge.s32.totalorder %s876_s18, 1  ;;  %s876_s18 = sphi %s909_s18, %s15_s18  }
   0x2   : > { %p188_p1 = scmp.lt.s32.totalorder %s876_s18, 4 }
   0x4   : > { %p189_p2 = pnand %p709_p0, %p188_p1 }
   0x5   : > { %v231_v0 = vld [vmem:[%s1148_s1 + $0x8] sm:$0xff] (!%p189_p2)  ;;  %v233_v1 = vld [vmem:[%s1148_s1 + $0x18] sm:$0xff] (!%p189_p2)  ;;  %v230_v2 = vld [vmem:[%s1148_s1] sm:$0xff] (!%p189_p2)  ;;  %s710_s26 = sshll.u32 (!%p189_p2), %s705_s19, 1  ;;  %v878_v6 = vmov (!%p189_p2), 0.0   ;;  %vm256_vm0 = vcmask (!%p189_p2), 64512  }
   0x6   : > { %192 = sbr.rel (%p189_p2) target bundleno = 459 (0x1cb), region = 40  ;;  %263 = vmatprep.subr.mxu0 (!%p189_p2), %v231_v0  ;;  %340 = vmatprep.subr.mxu1 (!%p189_p2), %v233_v1  ;;  %v232_v3 = vld [vmem:[%s1148_s1 + $0x10] sm:$0xff] (!%p189_p2)  ;;  %p217_p3 = scmp.lt.s32.totalorder (!%p189_p2), %s710_s26, 5  ;;  %v441_v4 = vld [vmem:[%s1150_s3 + $0x80] sm:$0xff] (!%p189_p2)  ;;  %v442_v5 = vld [vmem:[%s1150_s3 + $0x88] sm:$0xff] (!%p189_p2)  ;;  %vm646_vm1 = vcmask (!%p189_p2), 261120  }
   0x7   : > { %264 = vmatpush1.msra.mxu0 (!%p189_p2), %v230_v2  ;;  %327 = vmatprep.mubr.f32.mxu0 (!%p189_p2), %v878_v6  ;;  %v797_v7 = vpack.c.bf16 (!%p189_p2), %v442_v5, %v441_v4  ;;  %v473_v8 = vld [vmem:[%s1150_s3 + $0x180] sm:$0xff] (!%p189_p2)  ;;  %v474_v9 = vld [vmem:[%s1150_s3 + $0x188] sm:$0xff] (!%p189_p2)  ;;  %v443_v15 = vld [vmem:[%s1150_s3 + $0x90] sm:$0xff] (!%p189_p2) }
   0x8   : > { %v425_v10 = vld [vmem:[%s1150_s3] sm:$0xff] (!%p189_p2)  ;;  %341 = vmatpush1.msra.mxu1 (!%p189_p2), %v232_v3  ;;  %404 = vmatprep.mubr.f32.mxu1 (!%p189_p2), %v878_v6  ;;  %v829_v11 = vpack.c.bf16 (!%p189_p2), %v474_v9, %v473_v8  ;;  %v426_v12 = vld [vmem:[%s1150_s3 + $0x8] sm:$0xff] (!%p189_p2)  ;;  %v444_v16 = vld [vmem:[%s1150_s3 + $0x98] sm:$0xff] (!%p189_p2) }
   0x9   : > { %v457_v13 = vld [vmem:[%s1150_s3 + $0x100] sm:$0xff] (!%p189_p2)  ;;  %v458_v14 = vld [vmem:[%s1150_s3 + $0x108] sm:$0xff] (!%p189_p2)  ;;  %798 = vmatprep.subr.bf16.mxu0 (!%p189_p2), %v797_v7  ;;  %v475_v17 = vld [vmem:[%s1150_s3 + $0x190] sm:$0xff] (!%p189_p2)  ;;  %v799_v19 = vpack.c.bf16 (!%p189_p2), %v426_v12, %v425_v10  ;;  %v801_v25 = vpack.c.bf16 (!%p189_p2), %v444_v16, %v443_v15 }
   0xa   : > { %830 = vmatprep.subr.bf16.mxu1 (!%p189_p2), %v829_v11  ;;  %v476_v18 = vld [vmem:[%s1150_s3 + $0x198] sm:$0xff] (!%p189_p2)  ;;  %v831_v20 = vpack.c.bf16 (!%p189_p2), %v458_v14, %v457_v13  ;;  %v427_v21 = vld [vmem:[%s1150_s3 + $0x10] sm:$0xff] (!%p189_p2)  ;;  %v445_v28 = vld [vmem:[%s1150_s3 + $0xa0] sm:$0xff] (!%p189_p2) }
   0xb   : > { %v428_v22 = vld [vmem:[%s1150_s3 + $0x18] sm:$0xff] (!%p189_p2)  ;;  %v459_v23 = vld [vmem:[%s1150_s3 + $0x110] sm:$0xff] (!%p189_p2)  ;;  %v833_v26 = vpack.c.bf16 (!%p189_p2), %v476_v18, %v475_v17  ;;  %v446_v29 = vld [vmem:[%s1150_s3 + $0xa8] sm:$0xff] (!%p189_p2) }
   0xc   : > { %v460_v27 = vld [vmem:[%s1150_s3 + $0x118] sm:$0xff] (!%p189_p2)  ;;  %v477_v30 = vld [vmem:[%s1150_s3 + $0x1a0] sm:$0xff] (!%p189_p2)  ;;  %v478_v31 = vld [vmem:[%s1150_s3 + $0x1a8] sm:$0xff] (!%p189_p2)  ;;  %v803_v33 = vpack.c.bf16 (!%p189_p2), %v428_v22, %v427_v21  ;;  %v805_v37 = vpack.c.bf16 (!%p189_p2), %v446_v29, %v445_v28 }
   0xd   : > { %s1154_s26 = smov (!%p217_p3, %s710_s26), 5  ;;  %v835_v34 = vpack.c.bf16 %v460_v27, %v459_v23  ;;  %v429_v35 = vld [vmem:[%s1150_s3 + $0x20] sm:$0xff]  ;;  %v430_v36 = vld [vmem:[%s1150_s3 + $0x28] sm:$0xff]  ;;  %v837_v38 = vpack.c.bf16 %v478_v31, %v477_v30  ;;  %v447_v41 = vld [vmem:[%s1150_s3 + $0xb0] sm:$0xff] }
   0xe   : > { %s711_s28 = sshll.u32 %s1154_s26, 3  ;;  %v461_v39 = vld [vmem:[%s1150_s3 + $0x120] sm:$0xff]  ;;  %v462_v40 = vld [vmem:[%s1150_s3 + $0x128] sm:$0xff]  ;;  %v448_v42 = vld [vmem:[%s1150_s3 + $0xb8] sm:$0xff]  ;;  %v807_v45 = vpack.c.bf16 %v430_v36, %v429_v35 }
   0xf   : > { %s220_s8 = scalar_lea.vmem %s1147_s0, %s711_s28  ;;  %v479_v43 = vld [vmem:[%s1150_s3 + $0x1b0] sm:$0xff]  ;;  %v480_v44 = vld [vmem:[%s1150_s3 + $0x1b8] sm:$0xff]  ;;  %v839_v46 = vpack.c.bf16 %v462_v40, %v461_v39  ;;  %v809_v49 = vpack.c.bf16 %v448_v42, %v447_v41  ;;  %v449_v53 = vld [vmem:[%s1150_s3 + $0xc0] sm:$0xff]  ;;  %v236_v39 = vlaneseq }
  0x10   : > { %v228_v24 = vld [vmem:[%s220_s8] sm:$0xff]  ;;  %v229_v32 = vld [vmem:[%s220_s8 + $0x8] sm:$0xff]  ;;  %v431_v47 = vld [vmem:[%s1150_s3 + $0x30] sm:$0xff]  ;;  %v841_v50 = vpack.c.bf16 %v480_v44, %v479_v43  ;;  %s226_s8 = scalar_lea.vmem %s1152_s5, %s711_s28 }
  0x11   : > { %714 = vmatmul.mubr.msk.f32.vlgmr.msra.gmra.mrb[0].mxu0 %vm256_vm0, %v228_v24  ;;  %716 = vmatmul.mubr.msk.f32.vlgmr.msra.gmra.mrb[0].mxu1 %vm256_vm0, %v228_v24  ;;  %v432_v48 = vld [vmem:[%s1150_s3 + $0x38] sm:$0xff]  ;;  %v463_v51 = vld [vmem:[%s1150_s3 + $0x130] sm:$0xff]  ;;  %v450_v54 = vld [vmem:[%s1150_s3 + $0xc8] sm:$0xff]  ;;  %v237_v40 = vshrl.u32 %v236_v39, 7 }
  0x12   : > { %333 = vmatprep.mubr.f32.mxu0 %v878_v6  ;;  %410 = vmatprep.mubr.f32.mxu1 %v878_v6  ;;  %v464_v52 = vld [vmem:[%s1150_s3 + $0x138] sm:$0xff]  ;;  %v481_v55 = vld [vmem:[%s1150_s3 + $0x1c0] sm:$0xff]  ;;  %v482_v56 = vld [vmem:[%s1150_s3 + $0x1c8] sm:$0xff]  ;;  %v811_v57 = vpack.c.bf16 %v432_v48, %v431_v47  ;;  %v813_v61 = vpack.c.bf16 %v450_v54, %v449_v53 }
  0x13   : > { %800 = vmatpush3.bf16.msra.mxu0 %v799_v19  ;;  %832 = vmatpush3.bf16.msra.mxu1 %v831_v20  ;;  %v843_v58 = vpack.c.bf16 %v464_v52, %v463_v51  ;;  %v433_v59 = vld [vmem:[%s1150_s3 + $0x40] sm:$0xff]  ;;  %v434_v60 = vld [vmem:[%s1150_s3 + $0x48] sm:$0xff]  ;;  %v845_v62 = vpack.c.bf16 %v482_v56, %v481_v55  ;;  %v451_v1 = vld [vmem:[%s1150_s3 + $0xd0] sm:$0xff]  ;;  %v238_v41 = vsub.s32 0, %v237_v40  ;;  %v246_v42 = vsub.s32 2, %v237_v40 }
  0x14   : > { %802 = vmatprep.subr.bf16.mxu0 %v801_v25  ;;  %834 = vmatprep.subr.bf16.mxu1 %v833_v26  ;;  %v465_v63 = vld [vmem:[%s1150_s3 + $0x140] sm:$0xff]  ;;  %v466_v0 = vld [vmem:[%s1150_s3 + $0x148] sm:$0xff]  ;;  %v452_v2 = vld [vmem:[%s1150_s3 + $0xd8] sm:$0xff]  ;;  %v815_v5 = vpack.c.bf16 %v434_v60, %v433_v59  ;;  %v242_v44 = vsub.s32 1, %v237_v40 }
  0x15   : > { %715 = vmatmul.mubr.msk.f32.gmra.mrb[2].mxu0 %vm256_vm0, %v229_v32  ;;  %717 = vmatmul.mubr.msk.f32.gmra.mrb[2].mxu1 %vm256_vm0, %v229_v32  ;;  %v483_v3 = vld [vmem:[%s1150_s3 + $0x1d0] sm:$0xff]  ;;  %v484_v4 = vld [vmem:[%s1150_s3 + $0x1d8] sm:$0xff]  ;;  %v847_v6 = vpack.c.bf16 %v466_v0, %v465_v63  ;;  %v817_v9 = vpack.c.bf16 %v452_v2, %v451_v1  ;;  %v453_v13 = vld [vmem:[%s1150_s3 + $0xe0] sm:$0xff] }
  0x16   : > { %v435_v7 = vld [vmem:[%s1150_s3 + $0x50] sm:$0xff]  ;;  %v436_v8 = vld [vmem:[%s1150_s3 + $0x58] sm:$0xff]  ;;  %v849_v10 = vpack.c.bf16 %v484_v4, %v483_v3  ;;  %v454_v14 = vld [vmem:[%s1150_s3 + $0xe8] sm:$0xff] }
  0x17   : > { %804 = vmatpush3.bf16.msra.mxu0 %v803_v33  ;;  %836 = vmatpush3.bf16.msra.mxu1 %v835_v34  ;;  %v467_v11 = vld [vmem:[%s1150_s3 + $0x150] sm:$0xff]  ;;  %v468_v12 = vld [vmem:[%s1150_s3 + $0x158] sm:$0xff]  ;;  %v485_v15 = vld [vmem:[%s1150_s3 + $0x1e0] sm:$0xff]  ;;  %v819_v17 = vpack.c.bf16 %v436_v8, %v435_v7  ;;  %v821_v19 = vpack.c.bf16 %v454_v14, %v453_v13 }
  0x18   : > { %806 = vmatprep.subr.bf16.mxu0 %v805_v37  ;;  %838 = vmatprep.subr.bf16.mxu1 %v837_v38  ;;  %v486_v16 = vld [vmem:[%s1150_s3 + $0x1e8] sm:$0xff]  ;;  %v851_v18 = vpack.c.bf16 %v468_v12, %v467_v11  ;;  %v437_v21 = vld [vmem:[%s1150_s3 + $0x60] sm:$0xff]  ;;  %v455_v27 = vld [vmem:[%s1150_s3 + $0xf0] sm:$0xff] }
  0x19   : > { %v853_v20 = vpack.c.bf16 %v486_v16, %v485_v15  ;;  %v438_v22 = vld [vmem:[%s1150_s3 + $0x68] sm:$0xff]  ;;  %v469_v23 = vld [vmem:[%s1150_s3 + $0x160] sm:$0xff]  ;;  %v456_v28 = vld [vmem:[%s1150_s3 + $0xf8] sm:$0xff] }
  0x1a   : > { %v823_v24 = vpack.c.bf16 %v438_v22, %v437_v21  ;;  %v470_v25 = vld [vmem:[%s1150_s3 + $0x168] sm:$0xff]  ;;  %v487_v29 = vld [vmem:[%s1150_s3 + $0x1f0] sm:$0xff]  ;;  %v825_v30 = vpack.c.bf16 %v456_v28, %v455_v27  ;;  %v488_v31 = vld [vmem:[%s1150_s3 + $0x1f8] sm:$0xff] }
  0x1b   : > { %808 = vmatpush3.bf16.msra.mxu0 %v807_v45  ;;  %840 = vmatpush3.bf16.msra.mxu1 %v839_v46  ;;  %v855_v26 = vpack.c.bf16 %v470_v25, %v469_v23  ;;  %v439_v32 = vld [vmem:[%s1150_s3 + $0x70] sm:$0xff]  ;;  %v440_v33 = vld [vmem:[%s1150_s3 + $0x78] sm:$0xff]  ;;  %v857_v34 = vpack.c.bf16 %v488_v31, %v487_v29  ;;  %v234_v43 = vld [vmem:[%s1149_s2] sm:$0xf]  ;;  %v250_v45 = vsub.s32 3, %v237_v40 }
  0x1c   : > { %810 = vmatprep.subr.bf16.mxu0 %v809_v49  ;;  %842 = vmatprep.subr.bf16.mxu1 %v841_v50  ;;  %v827_v35 = vpack.c.bf16 %v440_v33, %v439_v32  ;;  %v471_v36 = vld [vmem:[%s1150_s3 + $0x170] sm:$0xff]  ;;  %v472_v37 = vld [vmem:[%s1150_s3 + $0x178] sm:$0xff]  ;;  %v239_v46 = vrot.slane %v234_v43, %v238_v41  ;;  %v247_v47 = vrot.slane %v234_v43, %v246_v42  ;;  %v718_v12 = vld [vmem:[%s1151_s4] ss:$0 sm:$0xff] }
  0x1d   : > { %v859_v38 = vpack.c.bf16 %v472_v37, %v471_v36  ;;  %v243_v48 = vrot.slane %v234_v43, %v242_v44  ;;  %v251_v49 = vrot.slane %v234_v43, %v250_v45 }
  0x1f   : > { %812 = vmatpush3.bf16.msra.mxu0 %v811_v57  ;;  %844 = vmatpush3.bf16.msra.mxu1 %v843_v58 }
  0x20   : > { %814 = vmatprep.subr.bf16.mxu0 %v813_v61  ;;  %846 = vmatprep.subr.bf16.mxu1 %v845_v62 }
  0x23   : > { %816 = vmatpush3.bf16.msra.mxu0 %v815_v5  ;;  %848 = vmatpush3.bf16.msra.mxu1 %v847_v6 }
  0x24   : > { %818 = vmatprep.subr.bf16.mxu0 %v817_v9  ;;  %850 = vmatprep.subr.bf16.mxu1 %v849_v10 }
  0x27   : > { %820 = vmatpush3.bf16.msra.mxu0 %v819_v17  ;;  %852 = vmatpush3.bf16.msra.mxu1 %v851_v18 }
  0x28   : > { %822 = vmatprep.subr.bf16.mxu0 %v821_v19  ;;  %854 = vmatprep.subr.bf16.mxu1 %v853_v20 }
  0x2b   : > { %824 = vmatpush3.bf16.msra.mxu0 %v823_v24  ;;  %856 = vmatpush3.bf16.msra.mxu1 %v855_v26 }
  0x2c   : > { %826 = vmatprep.subr.bf16.mxu0 %v825_v30  ;;  %858 = vmatprep.subr.bf16.mxu1 %v857_v34 }
  0x2f   : > { %828 = vmatpush3.bf16.msra.mxu0 %v827_v35  ;;  %860 = vmatpush3.bf16.msra.mxu1 %v859_v38 }
  0xe4   : > { %v329_v50 = vpop.f32.mrb[0].mxu0  ;;  %v406_v51 = vpop.f32.mrb[0].mxu1 }
  0xe5   : > { %v330_v52 = vadd.f32 %v329_v50, %v239_v46  ;;  %v407_v53 = vadd.f32 %v406_v51, %v247_v47  ;;  %v331_v54 = vpop.f32.mrb[1].mxu0  ;;  %v408_v55 = vpop.f32.mrb[1].mxu1 }
  0xe6   : > { %v332_v56 = vadd.f32 %v331_v54, %v243_v48  ;;  %v409_v57 = vadd.f32 %v408_v55, %v251_v49 }
  0xe7   : > { %v419_v58 = vmax.f32 %v407_v53, 0.0  ;;  %v417_v63 = vmax.f32 %v330_v52, 0.0 }
  0xe8   : > { %v418_v59 = vmax.f32 %v332_v56, 0.0  ;;  %v420_v60 = vmax.f32 %v409_v57, 0.0  ;;  %v335_v61 = vpop.f32.mrb[2].mxu0  ;;  %v412_v62 = vpop.f32.mrb[2].mxu1 }
  0xe9   : > { %v336_v0 = vadd.f32 %v335_v61, %v239_v46  ;;  %v413_v1 = vadd.f32 %v412_v62, %v247_v47  ;;  %v337_v2 = vpop.f32.mrb[3].mxu0  ;;  %v414_v3 = vpop.f32.mrb[3].mxu1 }
  0xea   : > { %v338_v4 = vadd.f32 %v337_v2, %v243_v48  ;;  %v415_v5 = vadd.f32 %v414_v3, %v251_v49  ;;  %560 = vmatprep.mubr.f32.mxu0 %v418_v59  ;;  %635 = vmatprep.mubr.f32.mxu1 %v420_v60 }
  0xeb   : > { %v423_v6 = vmax.f32 %v413_v1, 0.0  ;;  %561 = vmatmul.mubr.f32.vlgmr.msra.gmra.mrb[4].mxu0 %v417_v63  ;;  %636 = vmatmul.mubr.f32.vlgmr.msra.gmra.mrb[4].mxu1 %v419_v58  ;;  %v421_v9 = vmax.f32 %v336_v0, 0.0 }
  0xec   : > { %v422_v7 = vmax.f32 %v338_v4, 0.0  ;;  %v424_v8 = vmax.f32 %v415_v5, 0.0 }
  0xee   : > { %565 = vmatprep.mubr.f32.mxu0 %v422_v7  ;;  %640 = vmatprep.mubr.f32.mxu1 %v424_v8 }
  0xef   : > { %566 = vmatmul.mubr.f32.gmra.mrb[6].mxu0 %v421_v9  ;;  %641 = vmatmul.mubr.f32.gmra.mrb[6].mxu1 %v423_v6 }
 0x1be   : > { %v753_v10 = vpop.f32.mrb[4].mxu0  ;;  %v791_v11 = vpop.f32.mrb[4].mxu1 }
 0x1bf   : > { %v754_v13 = vpop.f32.mrb[5].mxu0  ;;  %v792_v14 = vpop.f32.mrb[5].mxu1 }
 0x1c0   : > { %v755_v15 = vadd.f32 %v754_v13, %v753_v10  ;;  %v793_v16 = vadd.f32 %v792_v14, %v791_v11 }
 0x1c2   : > { %v563_v17 = vadd.f32 %v755_v15, %v718_v12  ;;  %v756_v18 = vpop.f32.mrb[6].mxu0  ;;  %v794_v19 = vpop.f32.mrb[6].mxu1 }
 0x1c3   : > { %v757_v20 = vpop.f32.mrb[7].mxu0  ;;  %v795_v21 = vpop.f32.mrb[7].mxu1 }
 0x1c4   : > { %v638_v22 = vadd.f32 %v793_v16, %v563_v17  ;;  %v758_v23 = vadd.f32 %v757_v20, %v756_v18  ;;  %v796_v24 = vadd.f32 %v795_v21, %v794_v19 }
 0x1c6   : > { %647 = vst.msk [vmem:[%s226_s8] sm:$0xff] %vm646_vm1, %v638_v22  ;;  %v568_v25 = vadd.f32 %v758_v23, %v718_v12 }
 0x1c8   : > { %v643_v26 = vadd.f32 %v796_v24, %v568_v25 }
 0x1ca   : > { %648 = vst.msk [vmem:[%s226_s8 + $0x8] sm:$0xff] %vm646_vm1, %v643_v26 }
 0x1cb PF: > { %s15_s18 = sadd.s32 1, %s876_s18  }
 0x1cc   : > { %p12_p4 = scmp.ge.s32.totalorder %s15_s18, 5  }
 0x1ce   :  { %14 = sbr.rel (!%p12_p4) target bundleno = 1 (0x1), region = 70 }

</bundles_post_ra>
